<compile_context>
chip_gen: v5e
topology: v5e:2x2
jax: 0.10.0
libtpu: 0.0.40
codegen_flags: <defaults>
</compile_context>

<pallas_src>
import jax
import jax.numpy as jnp
from jax.experimental import pallas as pl
from jax.experimental.pallas import tpu as pltpu


def _round_up(n, m):
    return ((n + m - 1) // m) * m


def _sigmoid(a):
    # Exactly sigmoid, but a single EUP op (tanh) instead of exp + divide.
    return 0.5 * jnp.tanh(0.5 * a) + 0.5


# ---------------------------------------------------------------------------
# Input prep (shift + pad fused into single jnp.pad ops; bias folded into V).
# ---------------------------------------------------------------------------
def _prep_inputs(x, V, b, W, c, Bp, Dp, Hp, compute_dtype):
    B, D = x.shape
    H = V.shape[1]
    # xprev[:, d] = x[:, d-1]  (zeros for d == 0), padded to (Bp, Dp)
    xprev = jnp.pad(x.astype(compute_dtype)[:, : D - 1], ((0, Bp - B), (1, Dp - D)))
    # wsh[h, d] = W[h, d-1]    (zeros for d == 0), padded to (Hp, Dp)
    wsh = jnp.pad(W.astype(compute_dtype)[:, : D - 1], ((0, Hp - H), (1, Dp - D)))
    # vb[h, d] = V[d, h] + b[d]  (bias folded pre-matmul, as in the reference), (Hp, Dp)
    vb = jnp.pad((V.T + b[None, :]).astype(compute_dtype), ((0, Hp - H), (0, Dp - D)))
    # c as a column vector (Hp, 1) so it broadcasts over the D (lane) axis in-kernel.
    c_col = jnp.pad(c.reshape(H, 1).astype(compute_dtype), ((0, Hp - H), (0, 0)))
    return xprev, wsh, vb, c_col


# ---------------------------------------------------------------------------
# General path: arbitrary real-valued x.  grid = (B tiles, D tiles, H chunks).
# D sits on lanes; the H reduction is an accumulate into a (tB, tD) f32 scratch.
# ---------------------------------------------------------------------------
def _nade_general_kernel(xprev_ref, wsh_ref, vb_ref, c_ref, out_ref, acc_ref):
    k = pl.program_id(2)

    @pl.when(k == 0)
    def _():
        acc_ref[...] = jnp.zeros_like(acc_ref)

    xprev = xprev_ref[...]          # (tB, tD)
    wsh = wsh_ref[...]              # (tH, tD)   W.T shifted by one along D
    vb = vb_ref[...]                # (tH, tD)   (V + b).T
    c = c_ref[...]                  # (tH, 1)

    # a[n, h, d] = xprev[n, d] * wsh[h, d] + c[h]
    a = xprev[:, None, :] * wsh[None, :, :] + c[None, :, :]      # (tB, tH, tD)
    h = _sigmoid(a)
    partial = (h * vb[None, :, :]).astype(jnp.float32)
    acc_ref[...] += jnp.sum(partial, axis=1)                     # sublane reduce, D stays on lanes

    @pl.when(k == pl.num_programs(2) - 1)
    def _():
        out_ref[...] = _sigmoid(acc_ref[...]).astype(out_ref.dtype)


def nade_forward_general(x, V, b, W, c, *, tB=128, tD=256, tH=8,
                         compute_dtype=jnp.float32):
    """NADE forward for arbitrary real-valued x.

    compute_dtype=jnp.bfloat16 halves VMEM per tile and speeds VPU/EUP on v6e/v7x
    (keep f32 on v5e); the accumulator and final sigmoid stay in f32 either way.
    """
    B, D = x.shape
    H = V.shape[1]
    tB = min(tB, _round_up(B, 8))
    tD = min(tD, _round_up(D, 128))
    tH = min(tH, _round_up(H, 8))
    Bp, Dp, Hp = _round_up(B, tB), _round_up(D, tD), _round_up(H, tH)
    xprev, wsh, vb, c_col = _prep_inputs(x, V, b, W, c, Bp, Dp, Hp, compute_dtype)

    grid = (Bp // tB, Dp // tD, Hp // tH)
    out = pl.pallas_call(
        _nade_general_kernel,
        out_shape=jax.ShapeDtypeStruct((Bp, Dp), jnp.float32),
        grid_spec=pltpu.PrefetchScalarGridSpec(
            num_scalar_prefetch=0,
            grid=grid,
            in_specs=[
                pl.BlockSpec((tB, tD), lambda i, j, k: (i, j)),   # xprev
                pl.BlockSpec((tH, tD), lambda i, j, k: (k, j)),   # W.T (shifted)
                pl.BlockSpec((tH, tD), lambda i, j, k: (k, j)),   # (V + b).T
                pl.BlockSpec((tH, 1), lambda i, j, k: (k, 0)),    # c column
            ],
            out_specs=pl.BlockSpec((tB, tD), lambda i, j, k: (i, j)),
            scratch_shapes=[pltpu.VMEM((tB, tD), jnp.float32)],
        ),
        compiler_params=pltpu.CompilerParams(
            dimension_semantics=("parallel", "parallel", "arbitrary"),
            vmem_limit_bytes=32 * 1024 * 1024,
        ),
        cost_estimate=pl.CostEstimate(
            flops=4 * B * D * H + 2 * B * D,
            transcendentals=B * D * H + B * D,
            bytes_accessed=4 * (3 * B * D + 2 * D * H + H),
        ),
    )(xprev, wsh, vb, c_col)
    return out[:B, :D]


# ---------------------------------------------------------------------------
# Binary-input fast path (x in {0, 1}):  sigmoid(x*w + c) takes only two values
# per (d, h), so per D-tile we build s0[d] = sum_h sig(c)*vb and
# s1[d] = sum_h sig(w + c)*vb once (at batch-tile 0) and the per-sample work is
# a memory-bound (B, D) elementwise pass.
# grid = (D tiles [parallel, split across cores], B tiles [arbitrary, sequential]).
# ---------------------------------------------------------------------------
def _nade_binary_kernel(xprev_ref, wsh_ref, vb_ref, c_ref, out_ref, s0_ref, s1_ref):
    bi = pl.program_id(1)

    @pl.when(bi == 0)
    def _():
        c = c_ref[...]              # (Hp, 1)
        vb = vb_ref[...]            # (Hp, tD)
        wsh = wsh_ref[...]          # (Hp, tD)
        s0_ref[...] = jnp.sum(_sigmoid(c) * vb, axis=0, keepdims=True)        # (1, tD)
        s1_ref[...] = jnp.sum(_sigmoid(wsh + c) * vb, axis=0, keepdims=True)  # (1, tD)

    xprev = xprev_ref[...]          # (tB, tD), values in {0, 1}
    s0 = s0_ref[...]
    s1 = s1_ref[...]
    logits = s0 + xprev * (s1 - s0)
    out_ref[...] = _sigmoid(logits).astype(out_ref.dtype)


def nade_forward_binary(x, V, b, W, c, *, tB=256, tD=512):
    """NADE forward assuming strictly binary x (NADE's normal regime)."""
    B, D = x.shape
    H = V.shape[1]
    tB = min(tB, _round_up(B, 8))
    tD = min(tD, _round_up(D, 128))
    Hp = _round_up(H, 8)
    Bp, Dp = _round_up(B, tB), _round_up(D, tD)
    xprev, wsh, vb, c_col = _prep_inputs(x, V, b, W, c, Bp, Dp, Hp, jnp.float32)

    grid = (Dp // tD, Bp // tB)   # D outer (megacore split); B inner so the s-tables are reused
    out = pl.pallas_call(
        _nade_binary_kernel,
        out_shape=jax.ShapeDtypeStruct((Bp, Dp), jnp.float32),
        grid_spec=pltpu.PrefetchScalarGridSpec(
            num_scalar_prefetch=0,
            grid=grid,
            in_specs=[
                pl.BlockSpec((tB, tD), lambda dj, bi: (bi, dj)),  # xprev
                pl.BlockSpec((Hp, tD), lambda dj, bi: (0, dj)),   # W.T (shifted)
                pl.BlockSpec((Hp, tD), lambda dj, bi: (0, dj)),   # (V + b).T
                pl.BlockSpec((Hp, 1), lambda dj, bi: (0, 0)),     # c column
            ],
            out_specs=pl.BlockSpec((tB, tD), lambda dj, bi: (bi, dj)),
            scratch_shapes=[pltpu.VMEM((1, tD), jnp.float32),
                            pltpu.VMEM((1, tD), jnp.float32)],
        ),
        compiler_params=pltpu.CompilerParams(
            dimension_semantics=("parallel", "arbitrary"),
            vmem_limit_bytes=32 * 1024 * 1024,
        ),
        cost_estimate=pl.CostEstimate(
            flops=6 * D * H + 4 * B * D,
            transcendentals=2 * D * H + B * D,
            bytes_accessed=4 * (2 * B * D + 2 * D * H + H),
        ),
    )(xprev, wsh, vb, c_col)
    return out[:B, :D]


def nade_forward(x, V, b, W, c, *, assume_binary=False):
    """Pallas implementation of NADE.forward(x)."""
    if assume_binary:
        return nade_forward_binary(x, V, b, W, c)
    return nade_forward_general(x, V, b, W, c)


# ---------------------------------------------------------------------------
# Pure-JAX transliteration of the PyTorch loop, for verification.
# ---------------------------------------------------------------------------
def nade_ref(x, V, b, W, c):
    B, D = x.shape
    hi = jax.lax.Precision.HIGHEST
    a_d = jnp.broadcast_to(c, (B, c.shape[1]))
    outs = []
    for d in range(D):
        h_d = jax.nn.sigmoid(a_d)
        w_col = V[d:d + 1, :].T + b[d:d + 1]          # (H, 1), bias folded pre-matmul
        outs.append(jax.nn.sigmoid(jnp.matmul(h_d, w_col, precision=hi)))
        a_d = jnp.matmul(x[:, d:d + 1], W[:, d:d + 1].T, precision=hi) + c
    return jnp.concatenate(outs, axis=1)


if __name__ == "__main__":
    B, D, H = 2, 8, 32

    key = jax.random.PRNGKey(0)
    k_v, k_w, k_b, k_c, k_x = jax.random.split(key, 5)

    # Xavier-style init for V, W (as the module does). b, c are zero-initialized in the
    # module; use small non-zero values here (as after training) to exercise the bias paths.
    xavier_std = (2.0 / (D + H)) ** 0.5
    V = jax.random.normal(k_v, (D, H), jnp.float32) * xavier_std
    W = jax.random.normal(k_w, (H, D), jnp.float32) * xavier_std
    b = 0.1 * jax.random.normal(k_b, (D,), jnp.float32)
    c = 0.1 * jax.random.normal(k_c, (1, H), jnp.float32)

    # Binary input batch (B, D), as NADE expects.
    x = jax.random.bernoulli(k_x, 0.5, (B, D)).astype(jnp.float32)

    ref = jax.block_until_ready(nade_ref(x, V, b, W, c))

    out_general = jax.block_until_ready(nade_forward(x, V, b, W, c))
    assert out_general.shape == (B, D)
    assert jnp.allclose(out_general, ref, atol=2e-5, rtol=2e-5), (out_general, ref)

    out_binary = jax.block_until_ready(nade_forward(x, V, b, W, c, assume_binary=True))
    assert out_binary.shape == (B, D)
    assert jnp.allclose(out_binary, ref, atol=2e-5, rtol=2e-5), (out_binary, ref)

    print("KERNEL_OK")
</pallas_src>

<mosaic_0001>
module attributes {stable_mosaic.version = 11 : i64} {
  func.func @_nade_general_kernel(%arg0: i32, %arg1: i32, %arg2: i32, %arg3: memref<8x128xf32, #tpu.memory_space<vmem>>, %arg4: memref<8x128xf32, #tpu.memory_space<vmem>>, %arg5: memref<8x128xf32, #tpu.memory_space<vmem>>, %arg6: memref<8x1xf32, #tpu.memory_space<vmem>>, %arg7: memref<8x128xf32, #tpu.memory_space<vmem>>, %arg8: memref<8x128xf32, #tpu.memory_space<vmem>>) attributes {dimension_semantics = [#tpu.dimension_semantics<parallel>, #tpu.dimension_semantics<parallel>, #tpu.dimension_semantics<arbitrary>], iteration_bounds = array<i64: 1, 1, 4>, scalar_prefetch = 0 : i64, scratch_operands = 1 : i64, tpu.core_type = #tpu.core_type<tc>, window_params = [{transform_indices = @transform_0, window_bounds = array<i64: 8, 128>}, {transform_indices = @transform_1, window_bounds = array<i64: 8, 128>}, {transform_indices = @transform_2, window_bounds = array<i64: 8, 128>}, {transform_indices = @transform_3, window_bounds = array<i64: 8, 1>}, {transform_indices = @transform_4, window_bounds = array<i64: 8, 128>}]} {
    %c0_i32 = arith.constant 0 : i32
    %0 = arith.cmpi eq, %arg2, %c0_i32 : i32
    %1 = arith.extui %0 : i1 to i32
    %c0_i32_0 = arith.constant 0 : i32
    %2 = arith.cmpi ne, %1, %c0_i32_0 : i32
    scf.if %2 {
      %cst_16 = arith.constant 0.000000e+00 : f32
      %32 = vector.broadcast %cst_16 : f32 to vector<8x128xf32>
      %c0_17 = arith.constant 0 : index
      %c0_18 = arith.constant 0 : index
      %33 = vector.load %arg8[%c0_17, %c0_18] : memref<8x128xf32, #tpu.memory_space<vmem>>, vector<8x128xf32>
      tpu.vector_store %arg8[%c0_17, %c0_18], %32 {strides = array<i32>} : memref<8x128xf32, #tpu.memory_space<vmem>>, vector<8x128xf32>,
    } else {
    }
    %c0 = arith.constant 0 : index
    %c0_1 = arith.constant 0 : index
    %3 = vector.load %arg3[%c0, %c0_1] : memref<8x128xf32, #tpu.memory_space<vmem>>, vector<8x128xf32>
    %c0_2 = arith.constant 0 : index
    %c0_3 = arith.constant 0 : index
    %4 = vector.load %arg4[%c0_2, %c0_3] : memref<8x128xf32, #tpu.memory_space<vmem>>, vector<8x128xf32>
    %c0_4 = arith.constant 0 : index
    %c0_5 = arith.constant 0 : index
    %5 = vector.load %arg5[%c0_4, %c0_5] : memref<8x128xf32, #tpu.memory_space<vmem>>, vector<8x128xf32>
    %c0_6 = arith.constant 0 : index
    %c0_7 = arith.constant 0 : index
    %6 = vector.load %arg6[%c0_6, %c0_7] : memref<8x1xf32, #tpu.memory_space<vmem>>, vector<8x1xf32>
    %7 = vector.shape_cast %3 : vector<8x128xf32> to vector<8x1x128xf32>
    %8 = vector.shape_cast %4 : vector<8x128xf32> to vector<1x8x128xf32>
    %9 = vector.broadcast %7 : vector<8x1x128xf32> to vector<8x8x128xf32>
    %10 = vector.broadcast %8 : vector<1x8x128xf32> to vector<8x8x128xf32>
    %11 = arith.mulf %9, %10 : vector<8x8x128xf32>
    %12 = vector.shape_cast %6 : vector<8x1xf32> to vector<1x8x1xf32>
    %13 = vector.broadcast %12 : vector<1x8x1xf32> to vector<8x8x128xf32>
    %14 = arith.addf %11, %13 : vector<8x8x128xf32>
    %cst = arith.constant 5.000000e-01 : f32
    %15 = vector.broadcast %cst : f32 to vector<8x8x128xf32>
    %16 = arith.mulf %15, %14 : vector<8x8x128xf32>
    %17 = math.tanh %16 : vector<8x8x128xf32>
    %cst_8 = arith.constant 5.000000e-01 : f32
    %18 = vector.broadcast %cst_8 : f32 to vector<8x8x128xf32>
    %19 = arith.mulf %18, %17 : vector<8x8x128xf32>
    %cst_9 = arith.constant 5.000000e-01 : f32
    %20 = vector.broadcast %cst_9 : f32 to vector<8x8x128xf32>
    %21 = arith.addf %19, %20 : vector<8x8x128xf32>
    %22 = vector.shape_cast %5 : vector<8x128xf32> to vector<1x8x128xf32>
    %23 = vector.broadcast %22 : vector<1x8x128xf32> to vector<8x8x128xf32>
    %24 = arith.mulf %21, %23 : vector<8x8x128xf32>
    %c0_10 = arith.constant 0 : index
    %c0_11 = arith.constant 0 : index
    %25 = vector.load %arg8[%c0_10, %c0_11] : memref<8x128xf32, #tpu.memory_space<vmem>>, vector<8x128xf32>
    %cst_12 = arith.constant dense<0.000000e+00> : vector<8x128xf32>
    %26 = vector.multi_reduction <add>, %24, %cst_12 [1] : vector<8x8x128xf32> to vector<8x128xf32>
    %27 = arith.addf %25, %26 : vector<8x128xf32>
    %c0_13 = arith.constant 0 : index
    %c0_14 = arith.constant 0 : index
    %28 = vector.load %arg8[%c0_13, %c0_14] : memref<8x128xf32, #tpu.memory_space<vmem>>, vector<8x128xf32>
    tpu.vector_store %arg8[%c0_13, %c0_14], %27 {strides = array<i32>} : memref<8x128xf32, #tpu.memory_space<vmem>>, vector<8x128xf32>,
    %c3_i32 = arith.constant 3 : i32
    %29 = arith.cmpi eq, %arg2, %c3_i32 : i32
    %30 = arith.extui %29 : i1 to i32
    %c0_i32_15 = arith.constant 0 : i32
    %31 = arith.cmpi ne, %30, %c0_i32_15 : i32
    scf.if %31 {
      %c0_16 = arith.constant 0 : index
      %c0_17 = arith.constant 0 : index
      %32 = vector.load %arg8[%c0_16, %c0_17] : memref<8x128xf32, #tpu.memory_space<vmem>>, vector<8x128xf32>
      %cst_18 = arith.constant 5.000000e-01 : f32
      %33 = vector.broadcast %cst_18 : f32 to vector<8x128xf32>
      %34 = arith.mulf %33, %32 : vector<8x128xf32>
      %35 = math.tanh %34 : vector<8x128xf32>
      %cst_19 = arith.constant 5.000000e-01 : f32
      %36 = vector.broadcast %cst_19 : f32 to vector<8x128xf32>
      %37 = arith.mulf %36, %35 : vector<8x128xf32>
      %cst_20 = arith.constant 5.000000e-01 : f32
      %38 = vector.broadcast %cst_20 : f32 to vector<8x128xf32>
      %39 = arith.addf %37, %38 : vector<8x128xf32>
      %c0_21 = arith.constant 0 : index
      %c0_22 = arith.constant 0 : index
      %40 = vector.load %arg7[%c0_21, %c0_22] : memref<8x128xf32, #tpu.memory_space<vmem>>, vector<8x128xf32>
      tpu.vector_store %arg7[%c0_21, %c0_22], %39 {strides = array<i32>} : memref<8x128xf32, #tpu.memory_space<vmem>>, vector<8x128xf32>,
    } else {
    }
    return
  }
  func.func @transform_0(%arg0: i32, %arg1: i32, %arg2: i32) -> (i32, i32) {
    %c0_i32 = arith.constant 0 : i32
    return %arg0, %arg1 : i32, i32
  }
  func.func @transform_1(%arg0: i32, %arg1: i32, %arg2: i32) -> (i32, i32) {
    %c0_i32 = arith.constant 0 : i32
    return %arg2, %arg1 : i32, i32
  }
  func.func @transform_2(%arg0: i32, %arg1: i32, %arg2: i32) -> (i32, i32) {
    %c0_i32 = arith.constant 0 : i32
    return %arg2, %arg1 : i32, i32
  }
  func.func @transform_3(%arg0: i32, %arg1: i32, %arg2: i32) -> (i32, i32) {
    %c0_i32 = arith.constant 0 : i32
    %c0_i32_0 = arith.constant 0 : i32
    return %arg2, %c0_i32 : i32, i32
  }
  func.func @transform_4(%arg0: i32, %arg1: i32, %arg2: i32) -> (i32, i32) {
    %c0_i32 = arith.constant 0 : i32
    return %arg0, %arg1 : i32, i32
  }
}

</mosaic_0001>

<bundles_post_ra>
// kernel: tpu_custom_call.1
= control target key start
LH: loop header
LB: loop body
LE: loop exit
PB: predicated region body
PF: predicated region fallthrough
CT: control target
= control target key end

     0   :  { %9 = vsyncpa [#allocation4], 0  ;;  %s1020_s0 = inlined_call_operand.hbm [shape: f32[8,128], index: 0, kind: input, shape index: {}]   ;;  %s1021_s1 = inlined_call_operand.vmem [shape: f32[32,128], index: 1, kind: input, shape index: {}]   ;;  %s1022_s2 = inlined_call_operand.hbm [shape: f32[32,128], index: 2, kind: input, shape index: {}]   ;;  %s1023_s3 = inlined_call_operand.vmem [shape: f32[32,1], index: 3, kind: input, shape index: {}]   ;;  %s1024_s4 = inlined_call_operand.hbm [shape: f32[8,128], index: 4, kind: output, shape index: {}]  }
   0x1   :  { %10 = vsyncpa [#allocation7], 0 }
   0x2   :  { %12 = vsyncpa [#allocation7 + $0x1], 0 }
   0x3   :  { %13 = vsyncpa [#allocation5], 0  ;;  %s888_s15 = smov 0   ;;  %s890_s16 = smov 0  }
   0x4   :  { %s892_s17 = smov 0   ;;  %s894_s18 = smov 0  }
   0x5   :  { %s896_s19 = smov 0   ;;  %s898_s20 = smov 0  }
   0x6 LB: > { %s600_s21 = sadd.s32 4294967295, %s857_s20   ;;  %p116_p0 = scmp.ne.s32.totalorder %s841_s16, %s837_s15  ;;  %s857_s20 = sphi %s898_s20, %s19_s20   ;;  %s853_s19 = sphi %s896_s19, %s1033_s19   ;;  %s849_s18 = sphi %s894_s18, %s1032_s18   ;;  %s845_s17 = sphi %s892_s17, %s1031_s17   ;;  %s841_s16 = sphi %s890_s16, %s1030_s16   ;;  %s837_s15 = sphi %s888_s15, %s1029_s15  }
   0x7   : > { %p920_p1 = scmp.eq.s32.totalorder %s600_s21, 0  ;;  %p601_p2 = scmp.ge.s32.totalorder %s857_s20, 1 }
   0x8   : > { %p181_p3 = scmp.lt.s32.totalorder %s857_s20, 5  ;;  %s196_s26 = sshll.u32 %s1020_s0, 4  ;;  %s197_s26 = int_to_ptr.hbm [resolvable:$true] %s196_s26 }
   0x9   : > { %p928_p4 = por %p920_p1, %p116_p0  ;;  %s859_s28 = smov [#allocation3]  }
   0xa   : > { %p935_p5 = pnand %p601_p2, %p181_p3  ;;  %s198_s29 = sshll.u32 %s859_s28, 4  ;;  %s199_s29 = int_to_ptr.vmem [resolvable:$true] %s198_s29 }
   0xb   : > { %s31_s30 = sadd.s32 1, %s853_s19  ;;  %p110_p9 = scmp.ne.s32.totalorder %s845_s17, %s841_s16 }
   0xc   : > { %p627_p6 = pneg %p935_p5  ;;  %p32_p8 = scmp.ge.s32.totalorder %s31_s30, 4 }
   0xd   : > { %p111_p10 = scmp.eq.s32.totalorder %s857_s20, 0  ;;  %s103_s5 = sadd.s32 1, %s845_s17 }
   0xe   : > { %p628_p7 = pnand %p627_p6, %p920_p1  ;;  %s1035_s30 = smov (%p32_p8, %s31_s30), 0 }
   0xf   : > { %p950_p11 = por %p111_p10, %p110_p9  ;;  %s98_s7 = ssub.s32 %s853_s19, %s1035_s30 }
  0x10   : > { %630 = dma.hbm_to_vmem [thread:$0]  (!%p628_p7), %s197_s26, 128, %s199_s29, [#allocation4]  }
  0x11   : > { %s219_s8 = sand.u32 1, %s845_s17   ;;  %p101_p12 = scmp.eq.s32.totalorder %s98_s7, 0 }
  0x12   : > { %p636_p13 = scmp.lt.s32.totalorder %s857_s20, 4  ;;  %s604_s9 = sshll.u32 %s219_s8, 3 }
  0x13   : > { %s605_s10 = sshll.u32 %s853_s19, 3  ;;  %s223_s24 = scalar_lea.vmem [#allocation6], %s604_s9 }
  0x14   : > { %s960_s11 = scalar_select %p101_p12, %s845_s17, %s103_s5  }
  0x15   : > { %s228_s14 = scalar_lea.hbm %s1022_s2, %s605_s10  ;;  %s232_s25 = sshll.u32 %s223_s24, 4  ;;  %s233_s25 = int_to_ptr.vmem [resolvable:$true] %s232_s25 }
  0x16   : > { %s230_s15 = sshll.u32 %s228_s14, 4  ;;  %p632_p0 = pnand %p636_p13, %p950_p11  ;;  %s231_s15 = int_to_ptr.hbm [resolvable:$true] %s230_s15 }
  0x17   : > { %s220_s26 = scalar_lea.sflag [#allocation7], %s219_s8  ;;  %248 = sbr.rel (%p935_p5) target bundleno = 227 (0xe3), region = 36 }
  0x18   : > { %634 = dma.hbm_to_vmem [thread:$0]  (!%p632_p0), %s231_s15, 128, %s233_s25, %s220_s26  }
  0x1c   : > { %824 = dma.done.wait (%p920_p1), [#allocation4], 128  }
  0x1d   : > { %826 = vsyncadd (%p920_p1), [#allocation4], 4294967168  ;;  %s255_s28 = sand.u32 1, %s841_s16  }
  0x1e   : > { %s974_s29 = sshll.u32 %s255_s28, 3  ;;  %s256_s5 = scalar_lea.sflag [#allocation7], %s255_s28 }
  0x1f   : > { %s259_s6 = scalar_lea.vmem [#allocation6], %s974_s29 }
  0x20   : > { %828 = dma.done.wait (%p928_p4), %s256_s5, 128  }
  0x21   : > { %830 = vsyncadd (%p928_p4), %s256_s5, 4294967168  ;;  %p291_p2 = scmp.lt.s32.totalorder %s849_s18, 3  ;;  %p611_p1 = scmp.ne.s32.totalorder %s849_s18, 0 }
  0x23   : > { %s292_s27 = scalar_select %p291_p2, %s849_s18, 3 }
  0x24   : > { %305 = sbr.rel (%p611_p1) target bundleno = 43 (0x2b), region = 48 }
  0x25   : > { %s609_s7 = sshll.u32 %s292_s27, 3 }
  0x26   : > { %s297_s9 = scalar_lea.vmem %s1021_s1, %s609_s7  ;;  %s301_s13 = scalar_lea.vmem %s1023_s3, %s609_s7 }
  0x29   : > { %v860_v0 = vmov 0.0  }
  0x2a   : > { %306 = vst [vmem:[#allocation2] sm:$0xff] %v860_v0 }
  0x2b PF: > { %v310_v1 = vld [vmem:[%s301_s13] sm:$0xff]  ;;  %v861_v2 = vmov 0   ;;  %v307_v3 = vld [vmem:[#allocation3] sm:$0xff]  ;;  %v309_v49 = vld [vmem:[%s259_s6] sm:$0xff]  ;;  %vm453_vm0 = vcmask 1041409   ;;  %vm455_vm1 = vcmask 1042434  }
  0x2c   : > { %692 = vset.pattern.permute.xlu0 %v861_v2  ;;  %v312_v4 = vrot.slane %v307_v3, 1  ;;  %v313_v5 = vrot.slane %v307_v3, 2  ;;  %v314_v6 = vrot.slane %v307_v3, 3  ;;  %v315_v7 = vrot.slane %v307_v3, 4  ;;  %v308_v15 = vld [vmem:[%s297_s9] sm:$0xff]  ;;  %p612_p3 = scmp.ne.s32.totalorder %s849_s18, 3 }
  0x2d   : > { %345 = vperm.xlu0 %692, %v310_v1   ;;  %v316_v8 = vrot.slane %v307_v3, 5  ;;  %v317_v9 = vrot.slane %v307_v3, 6  ;;  %v318_v10 = vrot.slane %v307_v3, 7  ;;  %v319_v11 = vperm.slane %v307_v3, 0 }
  0x2e   : > { %v320_v12 = vperm.slane %v312_v4, 0  ;;  %v321_v13 = vperm.slane %v313_v5, 0  ;;  %v322_v14 = vperm.slane %v314_v6, 0  ;;  %v323_v16 = vperm.slane %v315_v7, 0 }
  0x2f   : > { %v324_v17 = vperm.slane %v316_v8, 0  ;;  %v325_v18 = vperm.slane %v317_v9, 0  ;;  %v326_v19 = vperm.slane %v318_v10, 0  ;;  %v335_v20 = vmul.f32 %v319_v11, %v308_v15 }
  0x30   : > { %v336_v21 = vmul.f32 %v320_v12, %v308_v15  ;;  %v337_v22 = vmul.f32 %v321_v13, %v308_v15  ;;  %v338_v23 = vmul.f32 %v322_v14, %v308_v15  ;;  %v339_v24 = vmul.f32 %v323_v16, %v308_v15 }
  0x31   : > { %v340_v25 = vmul.f32 %v324_v17, %v308_v15  ;;  %v341_v26 = vmul.f32 %v325_v18, %v308_v15  ;;  %v342_v28 = vmul.f32 %v326_v19, %v308_v15  ;;  %vm457_vm2 = vcmask 1043459  }
  0x32   : > { %vm459_vm3 = vcmask 1044484   ;;  %vm461_vm4 = vcmask 1045509   ;;  %vm463_vm5 = vcmask 1046534   ;;  %vm465_vm6 = vcmask 1047559  }
  0x9f   : > { %v346_v27 = vpop.permute.xlu0 %345 }
  0xa0   : > { %v348_v29 = vadd.f32 %v346_v27, %v335_v20  ;;  %v349_v30 = vadd.f32 %v346_v27, %v336_v21  ;;  %v350_v31 = vadd.f32 %v346_v27, %v337_v22  ;;  %v351_v32 = vadd.f32 %v346_v27, %v338_v23 }
  0xa1   : > { %v352_v33 = vadd.f32 %v346_v27, %v339_v24  ;;  %v353_v34 = vadd.f32 %v346_v27, %v340_v25  ;;  %v354_v35 = vadd.f32 %v346_v27, %v341_v26  ;;  %v355_v39 = vadd.f32 %v346_v27, %v342_v28 }
  0xa2   : > { %v356_v36 = vmul.f32 0.5, %v348_v29  ;;  %v357_v37 = vmul.f32 0.5, %v349_v30  ;;  %v358_v38 = vmul.f32 0.5, %v350_v31  ;;  %v359_v40 = vmul.f32 0.5, %v351_v32 }
  0xa3   : > { %v360_v41 = vmul.f32 0.5, %v352_v33  ;;  %v361_v42 = vmul.f32 0.5, %v353_v34  ;;  %v362_v43 = vmul.f32 0.5, %v354_v35  ;;  %v363_v44 = vmul.f32 0.5, %v355_v39 }
  0xa4   : > { %693 = vtanh.f32 %v356_v36 }
  0xa5   : > { %695 = vtanh.f32 %v357_v37 }
  0xa6   : > { %697 = vtanh.f32 %v358_v38 }
  0xa7   : > { %699 = vtanh.f32 %v359_v40 }
  0xa8   : > { %701 = vtanh.f32 %v360_v41 }
  0xa9   : > { %703 = vtanh.f32 %v361_v42 }
  0xaa   : > { %v694_v45 = vpop.eup %693  ;;  %705 = vtanh.f32 %v362_v43 }
  0xab   : > { %v696_v46 = vpop.eup %695  ;;  %707 = vtanh.f32 %v363_v44  ;;  %v372_v47 = vmul.f32 0.5, %v694_v45 }
  0xac   : > { %v698_v48 = vpop.eup %697  ;;  %v373_v50 = vmul.f32 0.5, %v696_v46 }
  0xad   : > { %v700_v51 = vpop.eup %699  ;;  %v374_v52 = vmul.f32 0.5, %v698_v48  ;;  %v380_v53 = vadd.f32 0.5, %v372_v47 }
  0xae   : > { %v702_v54 = vpop.eup %701  ;;  %v375_v55 = vmul.f32 0.5, %v700_v51  ;;  %v381_v56 = vadd.f32 0.5, %v373_v50 }
  0xaf   : > { %v704_v57 = vpop.eup %703  ;;  %v376_v58 = vmul.f32 0.5, %v702_v54  ;;  %v382_v59 = vadd.f32 0.5, %v374_v52  ;;  %v388_v60 = vmul.f32 %v380_v53, %v309_v49 }
  0xb0   : > { %v706_v61 = vpop.eup %705  ;;  %v377_v62 = vmul.f32 0.5, %v704_v57  ;;  %v383_v63 = vadd.f32 0.5, %v375_v55  ;;  %v389_v0 = vmul.f32 %v381_v56, %v309_v49 }
  0xb1   : > { %v708_v1 = vpop.eup %707  ;;  %v378_v2 = vmul.f32 0.5, %v706_v61  ;;  %v384_v3 = vadd.f32 0.5, %v376_v58  ;;  %v390_v4 = vmul.f32 %v382_v59, %v309_v49  ;;  %v397_v5 = vrot.slane %v388_v60, 4 }
  0xb2   : > { %v379_v6 = vmul.f32 0.5, %v708_v1  ;;  %v385_v7 = vadd.f32 0.5, %v377_v62  ;;  %v391_v8 = vmul.f32 %v383_v63, %v309_v49  ;;  %v403_v9 = vrot.slane %v389_v0, 4  ;;  %v396_v1 = vld [vmem:[#allocation2] sm:$0xff] }
  0xb3   : > { %v386_v10 = vadd.f32 0.5, %v378_v2  ;;  %v392_v11 = vmul.f32 %v384_v3, %v309_v49  ;;  %v398_v12 = vadd.f32 %v397_v5, %v388_v60  ;;  %v409_v13 = vrot.slane %v390_v4, 4 }
  0xb4   : > { %v387_v14 = vadd.f32 0.5, %v379_v6  ;;  %v393_v15 = vmul.f32 %v385_v7, %v309_v49  ;;  %v404_v16 = vadd.f32 %v403_v9, %v389_v0  ;;  %v415_v17 = vrot.slane %v391_v8, 4 }
  0xb5   : > { %v394_v18 = vmul.f32 %v386_v10, %v309_v49  ;;  %v399_v19 = vrot.slane %v398_v12, 2  ;;  %v410_v20 = vadd.f32 %v409_v13, %v390_v4  ;;  %v421_v21 = vrot.slane %v392_v11, 4 }
  0xb6   : > { %v395_v22 = vmul.f32 %v387_v14, %v309_v49  ;;  %v405_v23 = vrot.slane %v404_v16, 2  ;;  %v416_v24 = vadd.f32 %v415_v17, %v391_v8  ;;  %v427_v25 = vrot.slane %v393_v15, 4 }
  0xb7   : > { %v400_v26 = vadd.f32 %v399_v19, %v398_v12  ;;  %v411_v27 = vrot.slane %v410_v20, 2  ;;  %v422_v28 = vadd.f32 %v421_v21, %v392_v11  ;;  %v433_v29 = vrot.slane %v394_v18, 4 }
  0xb8   : > { %v406_v30 = vadd.f32 %v405_v23, %v404_v16  ;;  %v417_v31 = vrot.slane %v416_v24, 2  ;;  %v428_v32 = vadd.f32 %v427_v25, %v393_v15  ;;  %v439_v33 = vrot.slane %v395_v22, 4 }
  0xb9   : > { %v401_v34 = vrot.slane %v400_v26, 1  ;;  %v412_v35 = vadd.f32 %v411_v27, %v410_v20  ;;  %v423_v36 = vrot.slane %v422_v28, 2  ;;  %v434_v37 = vadd.f32 %v433_v29, %v394_v18 }
  0xba   : > { %v407_v38 = vrot.slane %v406_v30, 1  ;;  %v418_v39 = vadd.f32 %v417_v31, %v416_v24  ;;  %v429_v40 = vrot.slane %v428_v32, 2  ;;  %v440_v41 = vadd.f32 %v439_v33, %v395_v22 }
  0xbb   : > { %v402_v42 = vadd.f32 %v401_v34, %v400_v26  ;;  %v413_v43 = vrot.slane %v412_v35, 1  ;;  %v424_v44 = vadd.f32 %v423_v36, %v422_v28  ;;  %v435_v45 = vrot.slane %v434_v37, 2 }
  0xbc   : > { %v408_v46 = vadd.f32 %v407_v38, %v406_v30  ;;  %v419_v47 = vrot.slane %v418_v39, 1  ;;  %v430_v48 = vadd.f32 %v429_v40, %v428_v32  ;;  %v441_v49 = vrot.slane %v440_v41, 2 }
  0xbd   : > { %v414_v50 = vadd.f32 %v413_v43, %v412_v35  ;;  %v425_v51 = vrot.slane %v424_v44, 1  ;;  %v436_v52 = vadd.f32 %v435_v45, %v434_v37 }
  0xbe   : > { %v420_v53 = vadd.f32 %v419_v47, %v418_v39  ;;  %v431_v54 = vrot.slane %v430_v48, 1  ;;  %v442_v55 = vadd.f32 %v441_v49, %v440_v41  ;;  %v454_v56 = vsel %vm453_vm0, %v408_v46, %v402_v42 }
  0xbf   : > { %v426_v57 = vadd.f32 %v425_v51, %v424_v44  ;;  %v437_v58 = vrot.slane %v436_v52, 1  ;;  %v456_v59 = vsel %vm455_vm1, %v414_v50, %v454_v56 }
  0xc0   : > { %v432_v60 = vadd.f32 %v431_v54, %v430_v48  ;;  %v443_v61 = vrot.slane %v442_v55, 1  ;;  %v458_v62 = vsel %vm457_vm2, %v420_v53, %v456_v59 }
  0xc1   : > { %v438_v63 = vadd.f32 %v437_v58, %v436_v52  ;;  %v460_v0 = vsel %vm459_vm3, %v426_v57, %v458_v62 }
  0xc2   : > { %v444_v2 = vadd.f32 %v443_v61, %v442_v55  ;;  %v462_v3 = vsel %vm461_vm4, %v432_v60, %v460_v0 }
  0xc3   : > { %v464_v4 = vsel %vm463_vm5, %v438_v63, %v462_v3  ;;  %473 = sbr.rel (%p612_p3) target bundleno = 221 (0xdd), region = 52 }
  0xc4   : > { %v466_v5 = vsel %vm465_vm6, %v444_v2, %v464_v4 }
  0xc5   : > { %v468_v6 = vadd.f32 %v466_v5, %v396_v1 }
  0xc7   : > { %469 = vst [vmem:[#allocation2] sm:$0xff] %v468_v6 }
  0xce   : > { %v474_v7 = vld [vmem:[#allocation2] sm:$0xff] }
  0xcf   : > { %v475_v8 = vmul.f32 0.5, %v474_v7 }
  0xd1   : > { %709 = vtanh.f32 %v475_v8 }
  0xd7   : > { %v710_v9 = vpop.eup %709 }
  0xd8   : > { %v477_v10 = vmul.f32 0.5, %v710_v9 }
  0xda   : > { %v478_v11 = vadd.f32 0.5, %v477_v10 }
  0xdc   : > { %479 = vst [vmem:[#allocation8] sm:$0xff] %v478_v11 }
  0xdd PF: > { %p638_p4 = scmp.eq.s32.totalorder %s600_s21, 3  ;;  %s491_s15 = sshll.u32 %s1024_s4, 4  ;;  %s492_s15 = int_to_ptr.hbm [resolvable:$true] %s491_s15 }
  0xde   : > { %s862_s24 = smov [#allocation8]  }
  0xdf   : > { %s489_s25 = sshll.u32 %s862_s24, 4  ;;  %s490_s25 = int_to_ptr.vmem [resolvable:$true] %s489_s25 }
  0xe0   : > { %624 = dma.vmem_to_hbm [thread:$0]  (%p638_p4), %s490_s25, 128, %s492_s15, [#allocation5]  }
  0xe1   : > { %832 = dma.done.wait (%p638_p4), [#allocation5], 128  }
  0xe2   : > { %834 = vsyncadd (%p638_p4), [#allocation5], 4294967168 }
  0xe3 PF: > { %s19_s20 = sadd.s32 1, %s857_s20   ;;  %s1029_s15 = smov %s841_s16 }
  0xe4   : > { %p16_p5 = scmp.ge.s32.totalorder %s19_s20, 6   ;;  %s1030_s16 = smov %s845_s17 }
  0xe5   : > { %s1031_s17 = smov %s960_s11  ;;  %s1032_s18 = smov %s853_s19 }
  0xe6   : > { %s1033_s19 = smov %s1035_s30  ;;  %18 = sbr.rel (!%p16_p5) target bundleno = 6 (0x6), region = 94 }
  0xeb   :  { %505 = vsyncpa [#allocation4], 1 }
  0xec   :  { %507 = vsyncpa [#allocation4 + $0x1], 1 }
  0xed   :  { %508 = vsyncpa [#allocation7], 1 }
  0xee   :  { %510 = vsyncpa [#allocation7 + $0x1], 1 }
  0xef   :  { %511 = vsyncpa [#allocation5], 1 }
  0xf0   :  { %513 = vsyncpa [#allocation5 + $0x1], 1 }

</bundles_post_ra>
